<compile_context>
chip_gen: v7x
topology: tpu7x:2x2x1
jax: 0.10.0
libtpu: 0.0.40
codegen_flags: <defaults>
</compile_context>

<pallas_src>
import jax
import jax.numpy as jnp
from jax.experimental import pallas as pl
from jax.experimental.pallas import tpu as pltpu

INPUT_DIM = 28 * 28   # 784
OUTPUT_DIM = 10
LANE = 128


def _round_up(x, m):
    return ((x + m - 1) // m) * m


def linear_kernel(x_ref, w_ref, b_ref, o_ref):
    # x_ref: (tm, K)  w_ref: (K, n_pad)  b_ref: (1, n_pad)  o_ref: (tm, n_pad)
    acc = jnp.dot(x_ref[...], w_ref[...], preferred_element_type=jnp.float32)
    o_ref[...] = (acc + b_ref[...]).astype(o_ref.dtype)


def logistic_regression_forward(x, weight, bias, *, tm=512, use_bf16=True):
    """Forward pass of nn.Linear(INPUT_DIM, OUTPUT_DIM).

    x:      [M, INPUT_DIM] float32 (PyTorch row-major input layout)
    weight: [OUTPUT_DIM, INPUT_DIM] float32 (nn.Linear.weight layout)
    bias:   [OUTPUT_DIM] float32
    returns [M, OUTPUT_DIM] float32 logits = x @ weight.T + bias
    """
    M, K = x.shape
    N, K2 = weight.shape
    assert K == K2 == INPUT_DIM and N == OUTPUT_DIM

    # --- Lane-dense output: pad the 10-wide output dim to 128 lanes. ---
    n_pad = _round_up(N, LANE)
    w_t = jnp.zeros((K, n_pad), jnp.float32).at[:, :N].set(weight.T)
    b2d = jnp.zeros((1, n_pad), jnp.float32).at[:, :N].set(bias)

    # --- Batch tiling: big tiles for large M, clamp for tiny batches. ---
    tm_eff = min(tm, max(8, _round_up(M, 8)))
    m_pad = _round_up(M, tm_eff)
    if m_pad != M:
        x = jnp.pad(x, ((0, m_pad - M), (0, 0)))

    compute_dtype = jnp.bfloat16 if use_bf16 else jnp.float32
    x_c = x.astype(compute_dtype)
    w_c = w_t.astype(compute_dtype)

    grid = (m_pad // tm_eff,)
    itemsize = jnp.dtype(compute_dtype).itemsize
    cost = pl.CostEstimate(
        flops=2 * m_pad * K * n_pad,
        transcendentals=0,
        bytes_accessed=m_pad * K * itemsize + K * n_pad * itemsize + m_pad * n_pad * 4,
    )

    out = pl.pallas_call(
        linear_kernel,
        out_shape=jax.ShapeDtypeStruct((m_pad, n_pad), jnp.float32),
        grid_spec=pltpu.PrefetchScalarGridSpec(
            num_scalar_prefetch=0,
            grid=grid,
            in_specs=[
                pl.BlockSpec((tm_eff, K), lambda i: (i, 0)),   # batch tile of x
                pl.BlockSpec((K, n_pad), lambda i: (0, 0)),    # full weight, resident
                pl.BlockSpec((1, n_pad), lambda i: (0, 0)),    # bias, resident
            ],
            out_specs=pl.BlockSpec((tm_eff, n_pad), lambda i: (i, 0)),
        ),
        compiler_params=pltpu.CompilerParams(
            dimension_semantics=("parallel",),
            vmem_limit_bytes=32 * 1024 * 1024,
        ),
        cost_estimate=cost,
    )(x_c, w_c, b2d)

    # Strip batch padding and the lane padding back to the true logits.
    return out[:M, :N]


def reference_forward(x, weight, bias):
    return x @ weight.T + bias[None, :]


if __name__ == "__main__":
    key = jax.random.PRNGKey(0)
    kx, kw, kb = jax.random.split(key, 3)

    # Small shapes; batch=12 is deliberately not a tile multiple to exercise
    # the padding / slicing path.
    batch = 12
    x = jax.random.normal(kx, (batch, INPUT_DIM), dtype=jnp.float32)

    # Deterministic params (mimics nn.Linear uniform(-1/sqrt(fan_in), +1/sqrt(fan_in)))
    bound = 1.0 / jnp.sqrt(jnp.float32(INPUT_DIM))
    w = jax.random.uniform(kw, (OUTPUT_DIM, INPUT_DIM), jnp.float32, -bound, bound)
    b = jax.random.uniform(kb, (OUTPUT_DIM,), jnp.float32, -bound, bound)

    ref = reference_forward(x, w, b)

    # Full-precision path (exact check).
    out_f32 = jax.block_until_ready(
        logistic_regression_forward(x, w, b, use_bf16=False))
    assert out_f32.shape == (batch, OUTPUT_DIM)
    assert jnp.allclose(out_f32, ref, atol=1e-4, rtol=1e-4)

    # bf16 fast path (f32 accumulation; looser tolerance on logits).
    out_bf16 = jax.block_until_ready(
        logistic_regression_forward(x, w, b, use_bf16=True))
    assert out_bf16.shape == (batch, OUTPUT_DIM)
    assert jnp.allclose(out_bf16, ref, atol=5e-2, rtol=5e-2)

    print("KERNEL_OK")
</pallas_src>

<mosaic_0001>
module attributes {stable_mosaic.version = 11 : i64} {
  func.func @linear_kernel(%arg0: i32, %arg1: memref<16x784xf32, #tpu.memory_space<vmem>>, %arg2: memref<784x128xf32, #tpu.memory_space<vmem>>, %arg3: memref<1x128xf32, #tpu.memory_space<vmem>>, %arg4: memref<16x128xf32, #tpu.memory_space<vmem>>) attributes {dimension_semantics = [#tpu.dimension_semantics<parallel>], iteration_bounds = array<i64: 1>, scalar_prefetch = 0 : i64, scratch_operands = 0 : i64, tpu.core_type = #tpu.core_type<tc>, window_params = [{transform_indices = @transform_0, window_bounds = array<i64: 16, 784>}, {pipeline_mode = #tpu.pipeline_mode<synchronous>, transform_indices = @transform_1, window_bounds = array<i64: 784, 128>}, {pipeline_mode = #tpu.pipeline_mode<synchronous>, transform_indices = @transform_2, window_bounds = array<i64: 1, 128>}, {transform_indices = @transform_3, window_bounds = array<i64: 16, 128>}]} {
    %c0 = arith.constant 0 : index
    %c0_0 = arith.constant 0 : index
    %0 = vector.load %arg1[%c0, %c0_0] : memref<16x784xf32, #tpu.memory_space<vmem>>, vector<16x784xf32>
    %c0_1 = arith.constant 0 : index
    %c0_2 = arith.constant 0 : index
    %1 = vector.load %arg2[%c0_1, %c0_2] : memref<784x128xf32, #tpu.memory_space<vmem>>, vector<784x128xf32>
    %cst = arith.constant dense<0.000000e+00> : vector<16x128xf32>
    %2 = tpu.matmul %0, %1, %cst {dimension_numbers = #tpu.dot_dimension_numbers<[1], [0], [0], [1], [0, 0, 1, 1], [], []>} : vector<16x784xf32>, vector<784x128xf32>, vector<16x128xf32> -> vector<16x128xf32>
    %c0_3 = arith.constant 0 : index
    %c0_4 = arith.constant 0 : index
    %3 = vector.load %arg3[%c0_3, %c0_4] : memref<1x128xf32, #tpu.memory_space<vmem>>, vector<1x128xf32>
    %4 = vector.broadcast %3 : vector<1x128xf32> to vector<16x128xf32>
    %5 = arith.addf %2, %4 : vector<16x128xf32>
    %c0_5 = arith.constant 0 : index
    %c0_6 = arith.constant 0 : index
    %6 = vector.load %arg4[%c0_5, %c0_6] : memref<16x128xf32, #tpu.memory_space<vmem>>, vector<16x128xf32>
    tpu.vector_store %arg4[%c0_5, %c0_6], %5 {strides = array<i32>} : memref<16x128xf32, #tpu.memory_space<vmem>>, vector<16x128xf32>,
    return
  }
  func.func @transform_0(%arg0: i32) -> (i32, i32) {
    %c0_i32 = arith.constant 0 : i32
    %c0_i32_0 = arith.constant 0 : i32
    return %arg0, %c0_i32 : i32, i32
  }
  func.func @transform_1(%arg0: i32) -> (i32, i32) {
    %c0_i32 = arith.constant 0 : i32
    %c0_i32_0 = arith.constant 0 : i32
    %c0_i32_1 = arith.constant 0 : i32
    return %c0_i32, %c0_i32_0 : i32, i32
  }
  func.func @transform_2(%arg0: i32) -> (i32, i32) {
    %c0_i32 = arith.constant 0 : i32
    %c0_i32_0 = arith.constant 0 : i32
    %c0_i32_1 = arith.constant 0 : i32
    return %c0_i32, %c0_i32_0 : i32, i32
  }
  func.func @transform_3(%arg0: i32) -> (i32, i32) {
    %c0_i32 = arith.constant 0 : i32
    %c0_i32_0 = arith.constant 0 : i32
    return %arg0, %c0_i32 : i32, i32
  }
}

</mosaic_0001>

<bundles_post_ra>
// kernel: tpu_custom_call.1
= control target key start
LH: loop header
LB: loop body
LE: loop exit
PB: predicated region body
PF: predicated region fallthrough
CT: control target
= control target key end

     0   :  { %8 = vsyncpa [#allocation3], 0  ;;  %s868_s0 = inlined_call_operand.hbm [shape: f32[16,784], index: 0, kind: input, shape index: {}]   ;;  %s869_s1 = inlined_call_operand.hbm [shape: f32[784,128], index: 1, kind: input, shape index: {}]   ;;  %s870_s2 = inlined_call_operand.vmem [shape: f32[1,128], index: 2, kind: input, shape index: {}]   ;;  %s871_s3 = inlined_call_operand.hbm [shape: f32[16,128], index: 3, kind: output, shape index: {}]  }
   0x1   :  { %9 = vsyncpa [#allocation6], 0 }
   0x2   :  { %10 = vsyncpa [#allocation4], 0  ;;  %s796_s12 = smov [#allocation2]   ;;  %s724_s16 = scalar_lea.hbm %s868_s0, 1792 }
   0x3   :  { %s16_s13 = sshll.u32 %s796_s12, 4  ;;  %p725_p0 = scmp.ne.s32.totalorder %s868_s0, %s724_s16  ;;  %s17_s13 = int_to_ptr.vmem [resolvable:$true] %s16_s13 }
   0x4   :  { %p728_p1 = scmp.lt.u32.totalorder %s724_s16, %s868_s0 }
   0x6   :  { %p730_p2 = pnand %p728_p1, %p725_p0 }
   0x8   :  { %733 = shalt.err (!%p730_p2)
}
   0x9   :  { %s734_s21 = scalar_lea.vmem %s17_s13, 1792  ;;  %p739_p4 = scmp.lt.s32.totalorder %s17_s13, %s17_s13 }
   0xa   :  { %p735_p3 = scmp.ne.s32.totalorder %s17_s13, %s734_s21  ;;  %p740_p5 = scmp.lt.s32.totalorder %s734_s21, %s734_s21 }
   0xc   :  { %p741_p6 = por %p740_p5, %p739_p4 }
   0xe   :  { %p742_p7 = pnand %p741_p6, %p735_p3 }
  0x10   :  { %745 = shalt.err (!%p742_p7)
}
  0x11   :  { %s797_s22 = smov 896   ;;  %s798_s23 = smov 56  }
  0x12   :  { %22 = dma.hbm_to_vmem [thread:$0]  %s868_s0, 1792, %s17_s13, [#allocation3], %s797_s22, %s797_s22, %s798_s23  }
  0x13   :  { %s799_s26 = smov [#allocation5]   ;;  %s746_s30 = scalar_lea.hbm %s869_s1, 12544 }
  0x14   :  { %s28_s27 = sshll.u32 %s799_s26, 4  ;;  %p747_p8 = scmp.ne.s32.totalorder %s869_s1, %s746_s30  ;;  %s29_s27 = int_to_ptr.vmem [resolvable:$true] %s28_s27 }
  0x15   :  { %p750_p9 = scmp.lt.u32.totalorder %s746_s30, %s869_s1 }
  0x17   :  { %p752_p10 = pnand %p750_p9, %p747_p8 }
  0x19   :  { %755 = shalt.err (!%p752_p10)
}
  0x1a   :  { %s756_s8 = scalar_lea.vmem %s29_s27, 12544  ;;  %p761_p12 = scmp.lt.s32.totalorder %s29_s27, %s29_s27 }
  0x1b   :  { %p757_p11 = scmp.ne.s32.totalorder %s29_s27, %s756_s8  ;;  %p762_p13 = scmp.lt.s32.totalorder %s756_s8, %s756_s8 }
  0x1d   :  { %p763_p0 = por %p762_p13, %p761_p12 }
  0x1f   :  { %p764_p1 = pnand %p763_p0, %p757_p11 }
  0x21   :  { %767 = shalt.err (!%p764_p1)
}
  0x22   :  { %s800_s0 = smov 128   ;;  %s801_s9 = smov 8  }
  0x23   :  { %34 = dma.hbm_to_vmem [thread:$0]  %s869_s1, 12544, %s29_s27, [#allocation6], %s800_s0, %s800_s0, %s801_s9  }
  0x24   :  { %790 = dma.done.wait [#allocation3], 1792  }
  0x25   :  { %791 = vsyncadd [#allocation3], 4294965504 }
  0x26   :  { %792 = dma.done.wait [#allocation6], 12544  }
  0x27   :  { %793 = vsyncadd [#allocation6], 4294954752  ;;  %v73_v0 = vld [vmem:[#allocation5 + $0x80] sm:$0xff]  ;;  %v74_v1 = vld [vmem:[#allocation5 + $0x88] sm:$0xff]  ;;  %vm162_vm0 = vcmask 130048  }
  0x28   :  { %v57_v2 = vld [vmem:[#allocation5] sm:$0xff]  ;;  %v617_v3 = vpack.c.bf16 %v74_v1, %v73_v0  ;;  %v58_v4 = vld [vmem:[#allocation5 + $0x8] sm:$0xff]  ;;  %v75_v11 = vld [vmem:[#allocation5 + $0x90] sm:$0xff] }
  0x29   :  { %v105_v5 = vld [vmem:[#allocation5 + $0x180] sm:$0xff]  ;;  %v106_v6 = vld [vmem:[#allocation5 + $0x188] sm:$0xff]  ;;  %v619_v7 = vpack.c.bf16 %v58_v4, %v57_v2  ;;  %v76_v13 = vld [vmem:[#allocation5 + $0x98] sm:$0xff] }
  0x2a   :  { %v649_v8 = vpack.c.bf16 %v106_v6, %v105_v5  ;;  %v89_v9 = vld [vmem:[#allocation5 + $0x100] sm:$0xff]  ;;  %v90_v10 = vld [vmem:[#allocation5 + $0x108] sm:$0xff]  ;;  %618 = vmatprep.subr.bf16.mxu0 %v617_v3  ;;  %v59_v14 = vld [vmem:[#allocation5 + $0x10] sm:$0xff]  ;;  %v621_v16 = vpack.c.bf16 %v76_v13, %v75_v11 }
  0x2b   :  { %v651_v12 = vpack.c.bf16 %v90_v10, %v89_v9  ;;  %v60_v15 = vld [vmem:[#allocation5 + $0x18] sm:$0xff]  ;;  %620 = vmatpush3.bf16.msra.mxu0 %v619_v7  ;;  %v107_v18 = vld [vmem:[#allocation5 + $0x190] sm:$0xff]  ;;  %v77_v23 = vld [vmem:[#allocation5 + $0xa0] sm:$0xff] }
  0x2c   :  { %650 = vmatprep.subr.bf16.mxu1 %v649_v8  ;;  %v623_v17 = vpack.c.bf16 %v60_v15, %v59_v14  ;;  %v108_v19 = vld [vmem:[#allocation5 + $0x198] sm:$0xff]  ;;  %v91_v20 = vld [vmem:[#allocation5 + $0x110] sm:$0xff]  ;;  %v78_v24 = vld [vmem:[#allocation5 + $0xa8] sm:$0xff]  ;;  %622 = vmatprep.subr.bf16.mxu0 %v621_v16 }
  0x2d   :  { %652 = vmatpush3.bf16.msra.mxu1 %v651_v12  ;;  %v653_v21 = vpack.c.bf16 %v108_v19, %v107_v18  ;;  %v92_v22 = vld [vmem:[#allocation5 + $0x118] sm:$0xff]  ;;  %v625_v26 = vpack.c.bf16 %v78_v24, %v77_v23  ;;  %v61_v27 = vld [vmem:[#allocation5 + $0x20] sm:$0xff]  ;;  %v62_v28 = vld [vmem:[#allocation5 + $0x28] sm:$0xff] }
  0x2e   :  { %v655_v25 = vpack.c.bf16 %v92_v22, %v91_v20  ;;  %v109_v29 = vld [vmem:[#allocation5 + $0x1a0] sm:$0xff]  ;;  %v110_v30 = vld [vmem:[#allocation5 + $0x1a8] sm:$0xff]  ;;  %v627_v33 = vpack.c.bf16 %v62_v28, %v61_v27  ;;  %v79_v35 = vld [vmem:[#allocation5 + $0xb0] sm:$0xff] }
  0x2f   :  { %654 = vmatprep.subr.bf16.mxu1 %v653_v21  ;;  %v93_v31 = vld [vmem:[#allocation5 + $0x120] sm:$0xff]  ;;  %v94_v32 = vld [vmem:[#allocation5 + $0x128] sm:$0xff]  ;;  %624 = vmatpush3.bf16.msra.mxu0 %v623_v17  ;;  %v657_v34 = vpack.c.bf16 %v110_v30, %v109_v29  ;;  %v80_v36 = vld [vmem:[#allocation5 + $0xb8] sm:$0xff] }
  0x30   :  { %v63_v37 = vld [vmem:[#allocation5 + $0x30] sm:$0xff]  ;;  %626 = vmatprep.subr.bf16.mxu0 %v625_v26  ;;  %v659_v38 = vpack.c.bf16 %v94_v32, %v93_v31  ;;  %v629_v39 = vpack.c.bf16 %v80_v36, %v79_v35  ;;  %v64_v40 = vld [vmem:[#allocation5 + $0x38] sm:$0xff]  ;;  %v81_v46 = vld [vmem:[#allocation5 + $0xc0] sm:$0xff] }
  0x31   :  { %656 = vmatpush3.bf16.msra.mxu1 %v655_v25  ;;  %v111_v41 = vld [vmem:[#allocation5 + $0x1b0] sm:$0xff]  ;;  %v112_v42 = vld [vmem:[#allocation5 + $0x1b8] sm:$0xff]  ;;  %v82_v47 = vld [vmem:[#allocation5 + $0xc8] sm:$0xff]  ;;  %v631_v48 = vpack.c.bf16 %v64_v40, %v63_v37 }
  0x32   :  { %658 = vmatprep.subr.bf16.mxu1 %v657_v34  ;;  %v661_v43 = vpack.c.bf16 %v112_v42, %v111_v41  ;;  %v95_v44 = vld [vmem:[#allocation5 + $0x130] sm:$0xff]  ;;  %v96_v45 = vld [vmem:[#allocation5 + $0x138] sm:$0xff]  ;;  %v113_v49 = vld [vmem:[#allocation5 + $0x1c0] sm:$0xff]  ;;  %v633_v52 = vpack.c.bf16 %v82_v47, %v81_v46 }
  0x33   :  { %628 = vmatpush3.bf16.msra.mxu0 %v627_v33  ;;  %v114_v50 = vld [vmem:[#allocation5 + $0x1c8] sm:$0xff]  ;;  %v663_v51 = vpack.c.bf16 %v96_v45, %v95_v44  ;;  %v65_v53 = vld [vmem:[#allocation5 + $0x40] sm:$0xff]  ;;  %v83_v58 = vld [vmem:[#allocation5 + $0xd0] sm:$0xff] }
  0x34   :  { %630 = vmatprep.subr.bf16.mxu0 %v629_v39  ;;  %v66_v54 = vld [vmem:[#allocation5 + $0x48] sm:$0xff]  ;;  %v97_v55 = vld [vmem:[#allocation5 + $0x140] sm:$0xff]  ;;  %v665_v56 = vpack.c.bf16 %v114_v50, %v113_v49  ;;  %v84_v59 = vld [vmem:[#allocation5 + $0xd8] sm:$0xff] }
  0x35   :  { %660 = vmatpush3.bf16.msra.mxu1 %v659_v38  ;;  %v98_v57 = vld [vmem:[#allocation5 + $0x148] sm:$0xff]  ;;  %v115_v60 = vld [vmem:[#allocation5 + $0x1d0] sm:$0xff]  ;;  %v116_v61 = vld [vmem:[#allocation5 + $0x1d8] sm:$0xff]  ;;  %v635_v62 = vpack.c.bf16 %v66_v54, %v65_v53  ;;  %v637_v0 = vpack.c.bf16 %v84_v59, %v83_v58 }
  0x36   :  { %662 = vmatprep.subr.bf16.mxu1 %v661_v43  ;;  %v667_v63 = vpack.c.bf16 %v98_v57, %v97_v55  ;;  %v67_v1 = vld [vmem:[#allocation5 + $0x50] sm:$0xff]  ;;  %v68_v2 = vld [vmem:[#allocation5 + $0x58] sm:$0xff]  ;;  %v669_v4 = vpack.c.bf16 %v116_v61, %v115_v60  ;;  %v85_v6 = vld [vmem:[#allocation5 + $0xe0] sm:$0xff] }
  0x37   :  { %632 = vmatpush3.bf16.msra.mxu0 %v631_v48  ;;  %v99_v3 = vld [vmem:[#allocation5 + $0x150] sm:$0xff]  ;;  %v100_v5 = vld [vmem:[#allocation5 + $0x158] sm:$0xff]  ;;  %v86_v7 = vld [vmem:[#allocation5 + $0xe8] sm:$0xff]  ;;  %v639_v10 = vpack.c.bf16 %v68_v2, %v67_v1 }
  0x38   :  { %634 = vmatprep.subr.bf16.mxu0 %v633_v52  ;;  %v117_v8 = vld [vmem:[#allocation5 + $0x1e0] sm:$0xff]  ;;  %v118_v9 = vld [vmem:[#allocation5 + $0x1e8] sm:$0xff]  ;;  %v44_v12 = vld [vmem:[#allocation2 + $0x8] sm:$0xff]  ;;  %v671_v13 = vpack.c.bf16 %v100_v5, %v99_v3  ;;  %v641_v14 = vpack.c.bf16 %v86_v7, %v85_v6 }
  0x39   :  { %664 = vmatpush3.bf16.msra.mxu1 %v663_v51  ;;  %v69_v11 = vld [vmem:[#allocation5 + $0x60] sm:$0xff]  ;;  %v70_v15 = vld [vmem:[#allocation5 + $0x68] sm:$0xff]  ;;  %v673_v18 = vpack.c.bf16 %v118_v9, %v117_v8  ;;  %v87_v19 = vld [vmem:[#allocation5 + $0xf0] sm:$0xff]  ;;  %233 = vmatprep.mubr.f32.mxu0 %v44_v12 }
  0x3a   :  { %666 = vmatprep.subr.bf16.mxu1 %v665_v56  ;;  %v101_v16 = vld [vmem:[#allocation5 + $0x160] sm:$0xff]  ;;  %v102_v17 = vld [vmem:[#allocation5 + $0x168] sm:$0xff]  ;;  %v88_v20 = vld [vmem:[#allocation5 + $0xf8] sm:$0xff]  ;;  %v643_v24 = vpack.c.bf16 %v70_v15, %v69_v11 }
  0x3b   :  { %636 = vmatpush3.bf16.msra.mxu0 %v635_v62  ;;  %v46_v21 = vld [vmem:[#allocation2 + $0x18] sm:$0xff]  ;;  %v119_v22 = vld [vmem:[#allocation5 + $0x1f0] sm:$0xff]  ;;  %v120_v23 = vld [vmem:[#allocation5 + $0x1f8] sm:$0xff]  ;;  %v675_v25 = vpack.c.bf16 %v102_v17, %v101_v16  ;;  %v645_v26 = vpack.c.bf16 %v88_v20, %v87_v19 }
  0x3c   :  { %638 = vmatprep.subr.bf16.mxu0 %v637_v0  ;;  %308 = vmatprep.mubr.f32.mxu1 %v46_v21  ;;  %v71_v27 = vld [vmem:[#allocation5 + $0x70] sm:$0xff]  ;;  %v72_v28 = vld [vmem:[#allocation5 + $0x78] sm:$0xff]  ;;  %v677_v30 = vpack.c.bf16 %v120_v23, %v119_v22  ;;  %v137_v32 = vld [vmem:[#allocation5 + $0x280] sm:$0xff] }
  0x3d   :  { %668 = vmatpush3.bf16.msra.mxu1 %v667_v63  ;;  %v103_v29 = vld [vmem:[#allocation5 + $0x170] sm:$0xff]  ;;  %v104_v31 = vld [vmem:[#allocation5 + $0x178] sm:$0xff]  ;;  %v138_v33 = vld [vmem:[#allocation5 + $0x288] sm:$0xff]  ;;  %v647_v34 = vpack.c.bf16 %v72_v28, %v71_v27 }
  0x3e   :  { %670 = vmatprep.subr.bf16.mxu1 %v669_v4  ;;  %v679_v35 = vpack.c.bf16 %v104_v31, %v103_v29  ;;  %v681_v36 = vpack.c.bf16 %v138_v33, %v137_v32  ;;  %v121_v37 = vld [vmem:[#allocation5 + $0x200] sm:$0xff]  ;;  %v122_v38 = vld [vmem:[#allocation5 + $0x208] sm:$0xff]  ;;  %v139_v39 = vld [vmem:[#allocation5 + $0x290] sm:$0xff] }
  0x3f   :  { %640 = vmatpush3.bf16.msra.mxu0 %v639_v10  ;;  %v140_v40 = vld [vmem:[#allocation5 + $0x298] sm:$0xff]  ;;  %v43_v41 = vld [vmem:[#allocation2] sm:$0xff]  ;;  %v683_v42 = vpack.c.bf16 %v122_v38, %v121_v37  ;;  %v45_v43 = vld [vmem:[#allocation2 + $0x10] sm:$0xff] }
  0x40   :  { %642 = vmatprep.subr.bf16.mxu0 %v641_v14  ;;  %v685_v44 = vpack.c.bf16 %v140_v40, %v139_v39  ;;  %v123_v45 = vld [vmem:[#allocation5 + $0x210] sm:$0xff]  ;;  %v124_v46 = vld [vmem:[#allocation5 + $0x218] sm:$0xff]  ;;  %v141_v47 = vld [vmem:[#allocation5 + $0x2a0] sm:$0xff] }
  0x41   :  { %672 = vmatpush3.bf16.msra.mxu1 %v671_v13  ;;  %v142_v48 = vld [vmem:[#allocation5 + $0x2a8] sm:$0xff]  ;;  %v51_v49 = vld [vmem:[#allocation2 + $0x40] sm:$0xff]  ;;  %v53_v50 = vld [vmem:[#allocation2 + $0x50] sm:$0xff]  ;;  %v687_v53 = vpack.c.bf16 %v124_v46, %v123_v45 }
  0x42   :  { %674 = vmatprep.subr.bf16.mxu1 %v673_v18  ;;  %v153_v51 = vld [vmem:[#allocation5 + $0x300] sm:$0xff]  ;;  %v154_v52 = vld [vmem:[#allocation5 + $0x308] sm:$0xff]  ;;  %v689_v56 = vpack.c.bf16 %v142_v48, %v141_v47  ;;  %v52_v59 = vld [vmem:[#allocation2 + $0x48] sm:$0xff] }
  0x43   :  { %644 = vmatpush3.bf16.msra.mxu0 %v643_v24  ;;  %v50_v54 = vld [vmem:[#allocation2 + $0x38] sm:$0xff]  ;;  %v713_v55 = vpack.c.bf16 %v154_v52, %v153_v51  ;;  %v125_v57 = vld [vmem:[#allocation5 + $0x220] sm:$0xff]  ;;  %v143_v60 = vld [vmem:[#allocation5 + $0x2b0] sm:$0xff] }
  0x44   :  { %646 = vmatprep.subr.bf16.mxu0 %v645_v26  ;;  %v126_v58 = vld [vmem:[#allocation5 + $0x228] sm:$0xff]  ;;  %v144_v61 = vld [vmem:[#allocation5 + $0x2b8] sm:$0xff]  ;;  %v49_v63 = vld [vmem:[#allocation2 + $0x30] sm:$0xff] }
  0x45   :  { %676 = vmatpush3.bf16.msra.mxu1 %v675_v25  ;;  %v48_v62 = vld [vmem:[#allocation2 + $0x28] sm:$0xff]  ;;  %v691_v0 = vpack.c.bf16 %v126_v58, %v125_v57  ;;  %v693_v1 = vpack.c.bf16 %v144_v61, %v143_v60  ;;  %v127_v2 = vld [vmem:[#allocation5 + $0x230] sm:$0xff]  ;;  %v145_v5 = vld [vmem:[#allocation5 + $0x2c0] sm:$0xff] }
  0x46   :  { %678 = vmatprep.subr.bf16.mxu1 %v677_v30  ;;  %v128_v3 = vld [vmem:[#allocation5 + $0x238] sm:$0xff]  ;;  %v146_v6 = vld [vmem:[#allocation5 + $0x2c8] sm:$0xff]  ;;  %v129_v9 = vld [vmem:[#allocation5 + $0x240] sm:$0xff] }
  0x47   :  { %648 = vmatpush3.bf16.msra.mxu0 %v647_v34  ;;  %v56_v4 = vld [vmem:[#allocation2 + $0x68] sm:$0xff]  ;;  %v695_v7 = vpack.c.bf16 %v128_v3, %v127_v2  ;;  %v697_v8 = vpack.c.bf16 %v146_v6, %v145_v5  ;;  %v130_v10 = vld [vmem:[#allocation5 + $0x248] sm:$0xff]  ;;  %v147_v11 = vld [vmem:[#allocation5 + $0x2d0] sm:$0xff] }
  0x48   :  { %682 = vmatprep.subr.bf16.mxu0 %v681_v36  ;;  %v148_v12 = vld [vmem:[#allocation5 + $0x2d8] sm:$0xff]  ;;  %v699_v13 = vpack.c.bf16 %v130_v10, %v129_v9  ;;  %v131_v15 = vld [vmem:[#allocation5 + $0x250] sm:$0xff]  ;;  %v149_v17 = vld [vmem:[#allocation5 + $0x2e0] sm:$0xff] }
  0x49   :  { %680 = vmatpush3.bf16.msra.mxu1 %v679_v35  ;;  %v701_v14 = vpack.c.bf16 %v148_v12, %v147_v11  ;;  %v132_v16 = vld [vmem:[#allocation5 + $0x258] sm:$0xff]  ;;  %v150_v18 = vld [vmem:[#allocation5 + $0x2e8] sm:$0xff]  ;;  %v133_v21 = vld [vmem:[#allocation5 + $0x260] sm:$0xff] }
  0x4a   :  { %234 = vmatmul.mubr.f32.vlgmr.msra.gmra.mrb[0].mxu0 %v43_v41  ;;  %714 = vmatprep.subr.bf16.mxu1 %v713_v55  ;;  %v703_v19 = vpack.c.bf16 %v132_v16, %v131_v15  ;;  %v705_v20 = vpack.c.bf16 %v150_v18, %v149_v17  ;;  %v134_v22 = vld [vmem:[#allocation5 + $0x268] sm:$0xff]  ;;  %v151_v23 = vld [vmem:[#allocation5 + $0x2f0] sm:$0xff]  ;;  %v152_v24 = vld [vmem:[#allocation5 + $0x2f8] sm:$0xff] }
  0x4b   :  { %684 = vmatpush3.bf16.msra.mxu0 %v683_v42  ;;  %238 = vmatprep.mubr.f32.mxu0 %v51_v49  ;;  %v707_v25 = vpack.c.bf16 %v134_v22, %v133_v21  ;;  %v709_v26 = vpack.c.bf16 %v152_v24, %v151_v23  ;;  %v135_v27 = vld [vmem:[#allocation5 + $0x270] sm:$0xff]  ;;  %v136_v28 = vld [vmem:[#allocation5 + $0x278] sm:$0xff]  ;;  %v54_v32 = vld [vmem:[#allocation2 + $0x58] sm:$0xff] }
  0x4c   :  { %309 = vmatmul.mubr.f32.vlgmr.msra.gmra.mrb[0].mxu1 %v45_v43  ;;  %686 = vmatprep.subr.bf16.mxu0 %v685_v44  ;;  %v711_v29 = vpack.c.bf16 %v136_v28, %v135_v27  ;;  %v47_v30 = vld [vmem:[#allocation2 + $0x20] sm:$0xff] }
  0x4d   :  { %313 = vmatprep.mubr.f32.mxu1 %v53_v50  ;;  %716 = vmatpush3.bf16.msra.mxu1 %v713_v55  ;;  %v55_v31 = vld [vmem:[#allocation2 + $0x60] sm:$0xff] }
  0x4e   :  { %239 = vmatmul.mubr.f32.gmra.mrb[2].mxu0 %v50_v54  ;;  %v489_v34 = vld [vmem:[%s870_s2] ss:$0 sm:$0xff]  ;;  %s802_s2 = smov [#allocation7]  }
  0x4f   :  { %688 = vmatpush3.bf16.msra.mxu0 %v687_v53  ;;  %383 = vmatprep.mubr.f32.mxu0 %v48_v62  ;;  %s476_s13 = sshll.u32 %s802_s2, 4  ;;  %s477_s13 = int_to_ptr.vmem [resolvable:$true] %s476_s13 }
  0x50   :  { %314 = vmatmul.mubr.f32.gmra.mrb[2].mxu1 %v52_v59  ;;  %690 = vmatprep.subr.bf16.mxu0 %v689_v56  ;;  %s768_s14 = scalar_lea.vmem %s477_s13, 256  ;;  %p773_p3 = scmp.lt.s32.totalorder %s477_s13, %s477_s13 }
  0x51   :  { %614 = vmatprep.mubr.msk.f32.mxu1 %vm162_vm0, %v49_v63  ;;  %p769_p2 = scmp.ne.s32.totalorder %s477_s13, %s768_s14  ;;  %p774_p4 = scmp.lt.s32.totalorder %s768_s14, %s768_s14 }
  0x53   :  { %692 = vmatpush3.bf16.msra.mxu0 %v691_v0  ;;  %p775_p5 = por %p774_p4, %p773_p3 }
  0x54   :  { %615 = vmatmul.mubr.msk.f32.vlgmr.msra.gmra.mrb[4].mxu1 %vm162_vm0, %v56_v4  ;;  %694 = vmatprep.subr.bf16.mxu0 %v693_v1 }
  0x55   :  { %p776_p6 = pnand %p775_p5, %p769_p2 }
  0x57   :  { %696 = vmatpush3.bf16.msra.mxu0 %v695_v7 }
  0x58   :  { %698 = vmatprep.subr.bf16.mxu0 %v697_v8 }
  0x5b   :  { %700 = vmatpush3.bf16.msra.mxu0 %v699_v13 }
  0x5c   :  { %702 = vmatprep.subr.bf16.mxu0 %v701_v14 }
  0x5f   :  { %704 = vmatpush3.bf16.msra.mxu0 %v703_v19 }
  0x60   :  { %706 = vmatprep.subr.bf16.mxu0 %v705_v20 }
  0x63   :  { %708 = vmatpush3.bf16.msra.mxu0 %v707_v25 }
  0x64   :  { %710 = vmatprep.subr.bf16.mxu0 %v709_v26 }
  0x67   :  { %712 = vmatpush3.bf16.msra.mxu0 %v711_v29 }
  0x6a   :  { %384 = vmatmul.mubr.f32.vlgmr.msra.gmra.mrb[4].mxu0 %v47_v30 }
  0x6b   :  { %388 = vmatprep.mubr.f32.mxu0 %v55_v31 }
  0x6e   :  { %389 = vmatmul.mubr.f32.gmra.mrb[6].mxu0 %v54_v32 }
 0x11d   :  { %v524_v33 = vpop.f32.mrb[0].mxu0 }
 0x11e   :  { %v525_v35 = vpop.f32.mrb[1].mxu0 }
 0x11f   :  { %v562_v36 = vpop.f32.mrb[0].mxu1  ;;  %v526_v37 = vadd.f32 %v525_v35, %v524_v33 }
 0x120   :  { %v563_v38 = vpop.f32.mrb[1].mxu1 }
 0x121   :  { %v564_v39 = vadd.f32 %v563_v38, %v562_v36  ;;  %v236_v40 = vadd.f32 %v526_v37, %v489_v34  ;;  %v527_v41 = vpop.f32.mrb[2].mxu0 }
 0x122   :  { %v528_v42 = vpop.f32.mrb[3].mxu0 }
 0x123   :  { %v565_v43 = vpop.f32.mrb[2].mxu1  ;;  %v311_v44 = vadd.f32 %v564_v39, %v236_v40  ;;  %v529_v45 = vadd.f32 %v528_v42, %v527_v41 }
 0x124   :  { %v566_v46 = vpop.f32.mrb[3].mxu1 }
 0x125   :  { %v567_v47 = vadd.f32 %v566_v46, %v565_v43  ;;  %v241_v48 = vadd.f32 %v529_v45, %v489_v34 }
 0x127   :  { %v616_v49 = vpop.f32.mrb[4].mxu1  ;;  %v316_v50 = vadd.f32 %v567_v47, %v241_v48 }
 0x128   :  { %v460_v51 = vpop.f32.mrb[5].mxu1 }
 0x13d   :  { %v600_v52 = vpop.f32.mrb[4].mxu0 }
 0x13e   :  { %v601_v53 = vpop.f32.mrb[5].mxu0 }
 0x13f   :  { %v602_v54 = vadd.f32 %v601_v53, %v600_v52 }
 0x141   :  { %v603_v55 = vpop.f32.mrb[6].mxu0  ;;  %v386_v56 = vadd.f32 %v602_v54, %v311_v44 }
 0x142   :  { %v604_v57 = vpop.f32.mrb[7].mxu0 }
 0x143   :  { %v605_v58 = vadd.f32 %v604_v57, %v603_v55  ;;  %v461_v59 = vadd.f32 %v460_v51, %v386_v56 }
 0x145   :  { %v391_v60 = vadd.f32 %v605_v58, %v316_v50  ;;  %469 = vst [vmem:[#allocation7] sm:$0xff] %v461_v59 }
 0x147   :  { %v466_v61 = vadd.f32 %v616_v49, %v391_v60 }
 0x149   :  { %470 = vst [vmem:[#allocation7 + $0x8] sm:$0xff] %v466_v61 }
 0x14a   :  { %779 = shalt.err (!%p776_p6)
}
 0x14b   :  { %s780_s17 = scalar_lea.hbm %s871_s3, 256 }
 0x14c   :  { %p781_p7 = scmp.ne.s32.totalorder %s871_s3, %s780_s17  ;;  %p784_p8 = scmp.lt.u32.totalorder %s780_s17, %s871_s3 }
 0x14e   :  { %p786_p9 = pnand %p784_p8, %p781_p7 }
 0x150   :  { %789 = shalt.err (!%p786_p9)
}
 0x151   :  { %482 = dma.vmem_to_hbm [thread:$0]  %s477_s13, 256, %s871_s3, [#allocation4], %s800_s0, %s800_s0, %s801_s9  }
 0x152   :  { %794 = dma.done.wait [#allocation4], 256  }
 0x153   :  { %795 = vsyncadd [#allocation4], 4294967040 }
 0x154   :  { %486 = vsyncpa [#allocation3], 1 }
 0x155   :  { %487 = vsyncpa [#allocation6], 1 }
 0x156   :  { %488 = vsyncpa [#allocation4], 1 }

</bundles_post_ra>
